<compile_context>
chip_gen: v7x
topology: tpu7x:2x2x1
jax: 0.10.0
libtpu: 0.0.40
codegen_flags: <defaults>
</compile_context>

<pallas_src>
import jax
import jax.numpy as jnp
from jax.experimental import pallas as pl
from jax.experimental.pallas import tpu as pltpu


def _subspace_residual_kernel(x_ref, w_ref, diff_ref):
    # x_ref / diff_ref: (Bb, C, BLK) VMEM tiles; w_ref: (C, C) fc1 weight, VMEM-resident.
    w = w_ref[...].astype(jnp.float32)                               # (C, C)
    for b in range(x_ref.shape[0]):                                  # short static unroll over Bb
        x = x_ref[b].astype(jnp.float32)                             # (C, BLK)
        x1 = jnp.dot(w, x, preferred_element_type=jnp.float32)       # fc1 in channel-major layout
        diff_ref[b] = (x - x1).astype(diff_ref.dtype)


def _largest_divisor_leq(n, cap):
    cap = max(1, min(int(n), int(cap)))
    for d in range(cap, 0, -1):
        if n % d == 0:
            return d
    return 1


def subspace_cluster_forward(x, fc1_weight, *, block_hw=32768, torch_layout_diff=False):
    """SubspaceCluster.forward.

    Args:
      x:                 (N, C, H, W) feature map.
      fc1_weight:        (K, K) weight of nn.Linear(K, K, bias=False), K == C.
      block_hw:          max spatial tile width (rounded down to a multiple of 128).
      torch_layout_diff: if True, return diff_recons as (N, HW, C) (torch layout);
                         otherwise return the kernel's channel-major (N, C, HW),
                         which is equivalent for the module's MSE-vs-zero loss and
                         avoids an extra full HBM transpose pass.

    Returns:
      (X, diff_recons): X unchanged (module semantics) and the self-representation
      residual diff_recons = X_perm - fc1(X_perm).
    """
    N, C, H, W = x.shape
    K = fc1_weight.shape[0]
    assert fc1_weight.shape == (K, K) and K == C, "fc1 is Linear(K, K) with K == C"

    hw = H * W
    itemsize = jnp.dtype(x.dtype).itemsize
    x_flat = x.reshape(N, C, hw)          # no padding: partial last block handled by Pallas

    # --- tile selection: maximize bytes per grid step, stay VMEM-safe on all generations ---
    PER_BUF_BYTES = 3 * 1024 * 1024       # per operand, per pipeline buffer (x4 total <= 12 MiB)
    TARGET_STEP_BYTES = 1 * 1024 * 1024   # aim for >= ~1 MiB of x read per grid step
    BB_MAX = 8                            # keep the in-kernel batch unroll short

    block_hw = max(128, (int(block_hw) // 128) * 128)                 # lane-dense, never 0
    hw_lanes = pl.cdiv(hw, 128) * 128
    blk_vmem_cap = max(128, (PER_BUF_BYTES // max(1, C * itemsize)) // 128 * 128)
    blk = min(block_hw, hw_lanes, blk_vmem_cap)
    n_spatial = pl.cdiv(hw, blk)

    step_bytes = C * blk * itemsize
    bb_target = max(1, TARGET_STEP_BYTES // max(1, step_bytes))
    bb_vmem = max(1, PER_BUF_BYTES // max(1, step_bytes))
    bb = _largest_divisor_leq(N, min(BB_MAX, bb_target, bb_vmem))

    # Keep >= 2 grid steps when there is work to split, so v7x's 2 TensorCores both run.
    if pl.cdiv(N, bb) * n_spatial < 2:
        if N >= 2:
            bb = _largest_divisor_leq(N, max(1, N // 2))
        elif blk > 128 and hw > 128:
            blk = max(128, pl.cdiv(pl.cdiv(hw, 2), 128) * 128)
            n_spatial = pl.cdiv(hw, blk)

    grid = (pl.cdiv(N, bb), n_spatial)

    # VMEM: x + diff, double-buffered, plus the small resident weight; headroom, capped for v7x.
    vmem_need = 4 * bb * C * blk * itemsize + 2 * C * C * 4
    vmem_limit = int(min(32 * 1024 * 1024,
                         max(int(1.5 * vmem_need) + (1 << 20), 8 * 1024 * 1024)))

    cost = pl.CostEstimate(
        flops=2 * N * C * C * hw + N * C * hw,
        transcendentals=0,
        bytes_accessed=itemsize * 2 * N * C * hw + 4 * C * C,
    )

    diff_cm = pl.pallas_call(
        _subspace_residual_kernel,
        out_shape=jax.ShapeDtypeStruct((N, C, hw), x.dtype),
        grid=grid,
        in_specs=[
            pl.BlockSpec((bb, C, blk), lambda n, j: (n, 0, j)),
            pl.BlockSpec((C, C), lambda n, j: (0, 0)),
        ],
        out_specs=pl.BlockSpec((bb, C, blk), lambda n, j: (n, 0, j)),
        compiler_params=pltpu.CompilerParams(
            dimension_semantics=("parallel", "parallel"),
            vmem_limit_bytes=vmem_limit,
        ),
        cost_estimate=cost,
    )(x_flat, fc1_weight)

    diff_recons = jnp.transpose(diff_cm, (0, 2, 1)) if torch_layout_diff else diff_cm

    # TODO(synk): zeros_target_recons / zeros_target_norm are plain zero tensors consumed only
    # by later losses; callers can jnp.zeros_like them, so they are not faked here.
    return x, diff_recons


if __name__ == "__main__":
    key = jax.random.PRNGKey(0)
    k_x, k_w = jax.random.split(key)

    # SubspaceCluster(H=16, W=16, K=4) applied to X of shape (N, C, H, W) = (2, 4, 16, 16)
    N, C, H, W = 2, 4, 16, 16
    K = C
    x = jax.random.normal(k_x, (N, C, H, W), dtype=jnp.float32)
    fc1_weight = 0.1 * jax.random.normal(k_w, (K, K), dtype=jnp.float32)   # nn.Linear(K, K, bias=False)

    out, diff_cm = subspace_cluster_forward(x, fc1_weight)
    out, diff_cm = jax.block_until_ready((out, diff_cm))

    # Pure-JAX reference mirroring the PyTorch forward (channel-major form of the residual).
    x_flat = x.reshape(N, C, H * W)
    diff_cm_ref = x_flat - jnp.einsum("kc,nch->nkh", fc1_weight, x_flat)

    assert out.shape == (N, C, H, W)
    assert bool(jnp.array_equal(out, x))                          # forward returns X unchanged
    assert diff_cm.shape == (N, C, H * W)
    assert bool(jnp.allclose(diff_cm, diff_cm_ref, atol=2e-3, rtol=2e-3))

    # Equivalence with the module's (N, HW, C) diff_recons layout (tiny test shapes only).
    x_perm = jnp.transpose(x_flat, (0, 2, 1))
    diff_ref_torch = x_perm - jnp.einsum("nsc,kc->nsk", x_perm, fc1_weight)
    assert bool(jnp.allclose(jnp.transpose(diff_cm, (0, 2, 1)), diff_ref_torch,
                             atol=2e-3, rtol=2e-3))

    print("KERNEL_OK")
</pallas_src>

<mosaic_0001>
module attributes {stable_mosaic.version = 11 : i64} {
  func.func @_subspace_residual_kernel(%arg0: i32, %arg1: i32, %arg2: memref<1x4x256xf32, #tpu.memory_space<vmem>>, %arg3: memref<4x4xf32, #tpu.memory_space<vmem>>, %arg4: memref<1x4x256xf32, #tpu.memory_space<vmem>>) attributes {dimension_semantics = [#tpu.dimension_semantics<parallel>, #tpu.dimension_semantics<parallel>], iteration_bounds = array<i64: 2, 1>, scalar_prefetch = 0 : i64, scratch_operands = 0 : i64, tpu.core_type = #tpu.core_type<tc>, window_params = [{transform_indices = @transform_0, window_bounds = array<i64: 1, 4, 256>}, {pipeline_mode = #tpu.pipeline_mode<synchronous>, transform_indices = @transform_1, window_bounds = array<i64: 4, 4>}, {transform_indices = @transform_2, window_bounds = array<i64: 1, 4, 256>}]} {
    %c0 = arith.constant 0 : index
    %c0_0 = arith.constant 0 : index
    %0 = vector.load %arg3[%c0, %c0_0] : memref<4x4xf32, #tpu.memory_space<vmem>>, vector<4x4xf32>
    %c0_1 = arith.constant 0 : index
    %c0_2 = arith.constant 0 : index
    %c0_3 = arith.constant 0 : index
    %1 = vector.load %arg2[%c0_1, %c0_2, %c0_3] : memref<1x4x256xf32, #tpu.memory_space<vmem>>, vector<1x4x256xf32>
    %2 = vector.shape_cast %1 : vector<1x4x256xf32> to vector<4x256xf32>
    %cst = arith.constant dense<0.000000e+00> : vector<4x256xf32>
    %3 = tpu.matmul %0, %2, %cst {dimension_numbers = #tpu.dot_dimension_numbers<[1], [0], [0], [1], [0, 0, 1, 1], [], []>} : vector<4x4xf32>, vector<4x256xf32>, vector<4x256xf32> -> vector<4x256xf32>
    %4 = arith.subf %2, %3 : vector<4x256xf32>
    %c0_4 = arith.constant 0 : index
    %c0_5 = arith.constant 0 : index
    %c0_6 = arith.constant 0 : index
    %5 = vector.load %arg4[%c0_4, %c0_5, %c0_6] : memref<1x4x256xf32, #tpu.memory_space<vmem>>, vector<1x4x256xf32>
    %6 = vector.shape_cast %5 : vector<1x4x256xf32> to vector<4x256xf32>
    %7 = vector.shape_cast %4 : vector<4x256xf32> to vector<1x4x256xf32>
    tpu.vector_store %arg4[%c0_4, %c0_5, %c0_6], %7 {strides = array<i32>} : memref<1x4x256xf32, #tpu.memory_space<vmem>>, vector<1x4x256xf32>,
    return
  }
  func.func @transform_0(%arg0: i32, %arg1: i32) -> (i32, i32, i32) {
    %c0_i32 = arith.constant 0 : i32
    %c0_i32_0 = arith.constant 0 : i32
    return %arg0, %c0_i32, %arg1 : i32, i32, i32
  }
  func.func @transform_1(%arg0: i32, %arg1: i32) -> (i32, i32) {
    %c0_i32 = arith.constant 0 : i32
    %c0_i32_0 = arith.constant 0 : i32
    %c0_i32_1 = arith.constant 0 : i32
    return %c0_i32, %c0_i32_0 : i32, i32
  }
  func.func @transform_2(%arg0: i32, %arg1: i32) -> (i32, i32, i32) {
    %c0_i32 = arith.constant 0 : i32
    %c0_i32_0 = arith.constant 0 : i32
    return %arg0, %c0_i32, %arg1 : i32, i32, i32
  }
}

</mosaic_0001>

<bundles_post_ra>
// kernel: tpu_custom_call.1
= control target key start
LH: loop header
LB: loop body
LE: loop exit
PB: predicated region body
PF: predicated region fallthrough
CT: control target
= control target key end

     0   :  { %7 = vsyncpa [#allocation3], 0  ;;  %s872_s0 = inlined_call_operand.hbm [shape: f32[2,4,256], index: 0, kind: input, shape index: {}]   ;;  %s873_s1 = inlined_call_operand.hbm [shape: f32[4,4], index: 1, kind: input, shape index: {}]   ;;  %s874_s2 = inlined_call_operand.hbm [shape: f32[2,4,256], index: 2, kind: output, shape index: {}]  }
   0x1   :  { %9 = vsyncpa [#allocation3 + $0x1], 0 }
   0x2   :  { %10 = vsyncpa [#allocation6], 0 }
   0x3   :  { %11 = vsyncpa [#allocation4], 0 }
   0x4   :  { %13 = vsyncpa [#allocation4 + $0x1], 0  ;;  %s656_s9 = smov 0   ;;  %s658_s10 = smov 0  }
   0x5   :  { %s660_s11 = smov 0   ;;  %s662_s12 = smov 0  }
   0x6   :  { %s664_s13 = smov 0   ;;  %s666_s14 = smov 0  }
   0x7 LB: > { %s394_s15 = sadd.s32 4294967295, %s635_s14   ;;  %s395_s16 = sadd.s32 4294967294, %s635_s14   ;;  %s635_s14 = sphi %s666_s14, %s19_s14   ;;  %s631_s13 = sphi %s664_s13, %s899_s13   ;;  %s627_s12 = sphi %s662_s12, %s898_s12   ;;  %s623_s11 = sphi %s660_s11, %s897_s11   ;;  %s619_s10 = sphi %s658_s10, %s896_s10   ;;  %s615_s9 = sphi %s656_s9, %s895_s9  }
   0x8   : > { %p53_p0 = scmp.ne.s32.totalorder %s619_s10, %s615_s9  ;;  %p690_p1 = scmp.eq.s32.totalorder %s394_s15, 0 }
   0x9   : > { %p694_p2 = scmp.eq.s32.totalorder %s394_s15, 1  ;;  %p106_p3 = scmp.eq.s32.totalorder %s395_s16, 1 }
   0xa   : > { %s879_s17 = scalar_select %p690_p1, 1, 0 }
   0xb   : > { %s880_s18 = scalar_select %p694_p2, 1, 0 }
   0xc   : > { %p700_p4 = por %p690_p1, %p53_p0  ;;  %p396_p5 = scmp.ge.s32.totalorder %s635_s14, 1 }
   0xd   : > { %p705_p6 = por %p106_p3, %p53_p0  ;;  %p113_p7 = scmp.lt.s32.totalorder %s635_s14, 3 }
   0xe   : > { %s881_s19 = scalar_select %p700_p4, 1, 0 }
   0xf   : > { %s882_s20 = scalar_select %p705_p6, 1, 0 }
  0x10   : > { %p710_p8 = pnand %p396_p5, %p113_p7  ;;  %s637_s22 = smov [#allocation5]  }
  0x11   : > { %s126_s23 = sshll.u32 %s637_s22, 4  ;;  %s31_s25 = sadd.s32 1, %s631_s13  ;;  %s127_s23 = int_to_ptr.vmem [resolvable:$true] %s126_s23 }
  0x12   : > { %s883_s21 = scalar_select %p710_p8, 1, 0 }
  0x13   : > { %p424_p10 = pneg %p710_p8  ;;  %s40_s26 = sadd.s32 1, %s623_s11 }
  0x14   : > { %p725_p12 = scmp.ge.s32.totalorder %s31_s25, 2  ;;  %s491_s30 = scalar_lea.hbm %s873_s1, 64 }
  0x15   : > { %p719_p11 = pnand %p424_p10, %p690_p1  ;;  %p492_p13 = scmp.ne.s32.totalorder %s873_s1, %s491_s30 }
  0x16   : > { %s885_s27 = scalar_select %p725_p12, 1, 0 }
  0x17   : > { %p493_p0 = pneg %p719_p11  ;;  %p498_p7 = scmp.lt.u32.totalorder %s491_s30, %s873_s1 }
  0x19   : > { %p494_p3 = pnand %p493_p0, %p492_p13 }
  0x1b   : > { %p495_p5 = pneg %p494_p3 }
  0x1d   : > { %p500_p10 = pnand %p498_p7, %p495_p5 }
  0x1f   : > { %503 = shalt.err (!%p500_p10)
}
  0x20   : > { %s504_s7 = scalar_lea.vmem %s127_s23, 64  ;;  %p512_p4 = scmp.lt.s32.totalorder %s127_s23, %s127_s23 }
  0x21   : > { %p505_p9 = scmp.ne.s32.totalorder %s127_s23, %s504_s7  ;;  %p513_p8 = scmp.lt.s32.totalorder %s504_s7, %s504_s7 }
  0x23   : > { %p507_p6 = pnand %p505_p9, %p493_p0  ;;  %p514_p2 = por %p513_p8, %p512_p4 }
  0x25   : > { %p508_p1 = pneg %p507_p6 }
  0x27   : > { %p515_p12 = pnand %p514_p2, %p508_p1 }
  0x29   : > { %518 = shalt.err (!%p515_p12)
}
  0x2a   : > { %427 = dma.hbm_to_vmem [thread:$0]  (!%p719_p11), %s873_s1, 64, %s127_s23, [#allocation6]  }
  0x2b   : > { %p886_p4 = scmp.ne.s32.totalorder %s885_s27, 0  ;;  %p47_p1 = scmp.ne.s32.totalorder %s623_s11, %s619_s10 }
  0x2c   : > { %p48_p2 = scmp.eq.s32.totalorder %s635_s14, 0  ;;  %p437_p6 = scmp.lt.s32.totalorder %s635_s14, 2 }
  0x2d   : > { %s901_s25 = smov (%p886_p4, %s31_s25), 0  ;;  %p887_p12 = scmp.ne.s32.totalorder %s880_s18, 0 }
  0x2e   : > { %s35_s16 = ssub.s32 %s631_s13, %s901_s25  ;;  %p49_p9 = por %p48_p2, %p47_p1 }
  0x2f   : > { %p38_p8 = scmp.eq.s32.totalorder %s35_s16, 0  ;;  %p757_p13 = por %p887_p12, %p47_p1 }
  0x30   : > { %s137_s24 = sand.u32 1, %s623_s11   ;;  %s414_s27 = sshll.u32 %s631_s13, 7 }
  0x31   : > { %s765_s28 = scalar_select %p38_p8, %s623_s11, %s40_s26  }
  0x32   : > { %s399_s23 = sshll.u32 %s137_s24, 3  ;;  %s771_s3 = scalar_lea.hbm %s872_s0, %s414_s27 }
  0x33   : > { %s141_s18 = scalar_lea.vmem [#allocation2], %s399_s23  ;;  %p775_p11 = pnand %p437_p6, %p49_p9 }
  0x34   : > { %s151_s4 = sshll.u32 %s141_s18, 4  ;;  %s138_s26 = scalar_lea.sflag [#allocation3], %s137_s24  ;;  %s773_s4 = int_to_ptr.vmem [resolvable:$true] %s151_s4 }
  0x35   : > { %s519_s6 = scalar_lea.hbm %s771_s3, 128  ;;  %p521_p3 = pneg %p775_p11 }
  0x36   : > { %p520_p0 = scmp.ne.s32.totalorder %s771_s3, %s519_s6  ;;  %s524_s15 = scalar_lea.hbm %s872_s0, 256 }
  0x37   : > { %p525_p10 = scmp.lt.u32.totalorder %s771_s3, %s872_s0  ;;  %p526_p4 = scmp.lt.u32.totalorder %s524_s15, %s519_s6 }
  0x38   : > { %p522_p5 = pnand %p521_p3, %p520_p0  ;;  %p528_p2 = scmp.lt.u32.totalorder %s519_s6, %s771_s3 }
  0x39   : > { %p527_p1 = por %p526_p4, %p525_p10 }
  0x3a   : > { %p523_p7 = pneg %p522_p5 }
  0x3b   : > { %p529_p6 = por %p528_p2, %p527_p1 }
  0x3d   : > { %p530_p8 = pnand %p529_p6, %p523_p7 }
  0x3f   : > { %533 = shalt.err (!%p530_p8)
}
  0x40   : > { %s534_s24 = scalar_lea.vmem %s773_s4, 128  ;;  %s638_s27 = smov [#allocation2]  }
  0x41   : > { %p535_p9 = scmp.ne.s32.totalorder %s773_s4, %s534_s24  ;;  %s539_s29 = sshll.u32 %s638_s27, 4  ;;  %s540_s29 = int_to_ptr.vmem [resolvable:$false] %s539_s29 }
  0x42   : > { %s541_s30 = scalar_lea.vmem %s540_s29, 256  ;;  %p542_p5 = scmp.lt.s32.totalorder %s773_s4, %s540_s29 }
  0x43   : > { %p537_p12 = pnand %p535_p9, %p521_p3  ;;  %p543_p10 = scmp.lt.s32.totalorder %s541_s30, %s534_s24 }
  0x45   : > { %p538_p0 = pneg %p537_p12  ;;  %p544_p4 = por %p543_p10, %p542_p5 }
  0x47   : > { %p545_p1 = pnand %p544_p4, %p538_p0 }
  0x49   : > { %548 = shalt.err (!%p545_p1)
}
  0x4a   : > { %431 = dma.hbm_to_vmem [thread:$0]  (!%p775_p11), %s771_s3, 128, %s773_s4, %s138_s26  }
  0x4b   : > { %p890_p7 = scmp.ne.s32.totalorder %s883_s21, 0 }
  0x4c   : > { %s807_s18 = sand.u32 (!%p890_p7), 1, %s619_s10   ;;  %p891_p3 = scmp.ne.s32.totalorder (!%p890_p7), %s881_s19, 0 }
  0x4d   : > { %160 = sbr.rel (%p890_p7) target bundleno = 324 (0x144), region = 28  ;;  %s403_s6 = sshll.u32 (!%p890_p7), %s807_s18, 3 }
  0x4e   : > { %s163_s7 = scalar_lea.sflag (!%p890_p7), [#allocation3], %s807_s18  ;;  %s166_s8 = scalar_lea.vmem (!%p890_p7), [#allocation2], %s403_s6 }
  0x54   : > { %602 = dma.done.wait (%p891_p3), %s163_s7, 128  }
  0x55   : > { %604 = vsyncadd (%p891_p3), %s163_s7, 4294967168  ;;  %p892_p2 = scmp.ne.s32.totalorder %s879_s17, 0 }
  0x57   : > { %606 = dma.done.wait (%p892_p2), [#allocation6], 64  }
  0x58   : > { %608 = vsyncadd (%p892_p2), [#allocation6], 4294967232  ;;  %v639_v0 = vmov 0.0   ;;  %v194_v1 = vld [vmem:[%s166_s8] sm:$0xff]  ;;  %vm201_vm0 = vcmask 1043456   ;;  %vm197_vm1 = vcmask 31744  }
  0x59   : > { %270 = vmatprep.mubr.f32.mxu0 %v639_v0  ;;  %v196_v2 = vcombine.high %v194_v1, %v194_v1  ;;  %v193_v3 = vld [vmem:[#allocation5] sm:$0xf]  ;;  %s415_s19 = sshll.u32 %s627_s12, 7  ;;  %s190_s21 = scalar_lea.vmem [#allocation7], %s403_s6 }
  0x5a   : > { %s300_s3 = sshll.u32 %s190_s21, 4  ;;  %s823_s5 = scalar_lea.hbm %s874_s2, %s415_s19  ;;  %s825_s3 = int_to_ptr.vmem [resolvable:$true] %s300_s3 }
  0x5b   : > { %406 = vmatprep.subr.msk.mxu0 %vm201_vm0, %v196_v2  ;;  %s284_s26 = scalar_lea.sflag [#allocation4], %s807_s18  ;;  %s549_s15 = scalar_lea.vmem %s825_s3, 128 }
  0x5c   : > { %407 = vmatpush1.msk.msra.mxu0 %vm201_vm0, %v194_v1  ;;  %p550_p11 = scmp.ne.s32.totalorder %s825_s3, %s549_s15  ;;  %s640_s12 = smov [#allocation7]  }
  0x5d   : > { %408 = vmatmul.mubr.msk.f32.vlgmr.msra.gmra.mrb[0].mxu0 %vm197_vm1, %v193_v3  ;;  %s553_s16 = sshll.u32 %s640_s12, 4  ;;  %s554_s16 = int_to_ptr.vmem [resolvable:$false] %s553_s16 }
  0x5e   : > { %p551_p6 = pnand %p550_p11, %p757_p13  ;;  %s555_s23 = scalar_lea.vmem %s554_s16, 256 }
  0x5f   : > { %p556_p9 = scmp.lt.s32.totalorder %s825_s3, %s554_s16  ;;  %p557_p12 = scmp.lt.s32.totalorder %s555_s23, %s549_s15 }
  0x60   : > { %p552_p8 = pneg %p551_p6 }
  0x61   : > { %p558_p0 = por %p557_p12, %p556_p9 }
  0x63   : > { %p559_p5 = pnand %p558_p0, %p552_p8 }
 0x130   : > { %v272_v4 = vpop.f32.mrb[0].mxu0 }
 0x131   : > { %v274_v5 = vpop.f32.mrb[1].mxu0 }
 0x132   : > { %v279_v6 = vcombine.low %v272_v4, %v274_v5 }
 0x134   : > { %v281_v7 = vsub.f32 %v194_v1, %v279_v6 }
 0x136   : > { %282 = vst [vmem:[%s190_s21] sm:$0xff] %v281_v7 }
 0x137   : > { %562 = shalt.err (!%p559_p5)
}
 0x138   : > { %s563_s24 = scalar_lea.hbm %s823_s5, 128  ;;  %s567_s30 = scalar_lea.hbm %s874_s2, 256 }
 0x139   : > { %p564_p10 = scmp.ne.s32.totalorder %s823_s5, %s563_s24  ;;  %p568_p7 = scmp.lt.u32.totalorder %s823_s5, %s874_s2 }
 0x13a   : > { %p569_p3 = scmp.lt.u32.totalorder %s567_s30, %s563_s24  ;;  %p571_p11 = scmp.lt.u32.totalorder %s563_s24, %s823_s5 }
 0x13b   : > { %p565_p4 = pnand %p564_p10, %p757_p13 }
 0x13c   : > { %p570_p2 = por %p569_p3, %p568_p7 }
 0x13d   : > { %p566_p1 = pneg %p565_p4 }
 0x13e   : > { %p572_p6 = por %p571_p11, %p570_p2 }
 0x140   : > { %p573_p8 = pnand %p572_p6, %p566_p1 }
 0x142   : > { %576 = shalt.err (!%p573_p8)
}
 0x143   : > { %422 = dma.vmem_to_hbm [thread:$0]  (%p757_p13), %s825_s3, 128, %s823_s5, %s284_s26  }
 0x144 PF: > { %s312_s7 = sand.u32 1, %s615_s9   ;;  %p893_p9 = scmp.ne.s32.totalorder %s882_s20, 0 }
 0x145   : > { %p894_p12 = scmp.ge.s32.totalorder %s635_s14, 2  ;;  %s313_s8 = scalar_lea.sflag [#allocation4], %s312_s7 }
 0x147   : > { %p433_p0 = pnand %p894_p12, %p893_p9 }
 0x149   : > { %610 = dma.done.wait (!%p433_p0), %s313_s8, 128  }
 0x14a   : > { %612 = vsyncadd (!%p433_p0), %s313_s8, 4294967168  ;;  %s19_s14 = sadd.s32 1, %s635_s14   ;;  %s895_s9 = smov %s619_s10 }
 0x14b   : > { %p16_p5 = scmp.ge.s32.totalorder %s19_s14, 4   ;;  %s896_s10 = smov %s623_s11 }
 0x14c   : > { %s897_s11 = smov %s765_s28  ;;  %s898_s12 = smov %s631_s13 }
 0x14d   : > { %s899_s13 = smov %s901_s25  ;;  %18 = sbr.rel (!%p16_p5) target bundleno = 7 (0x7), region = 77 }
 0x154   :  { %318 = vsyncpa [#allocation3], 1 }
 0x155   :  { %320 = vsyncpa [#allocation3 + $0x1], 1 }
 0x156   :  { %321 = vsyncpa [#allocation6], 1 }
 0x157   :  { %322 = vsyncpa [#allocation4], 1 }
 0x158   :  { %324 = vsyncpa [#allocation4 + $0x1], 1 }

</bundles_post_ra>
